<compile_context>
chip_gen: v7x
topology: tpu7x:2x2x1
jax: 0.10.0
libtpu: 0.0.40
codegen_flags: <defaults>
</compile_context>

<pallas_src>
import jax
import jax.numpy as jnp
from jax.experimental import pallas as pl
from jax.experimental.pallas import tpu as pltpu

_LANE = 128                       # vreg lane width: last dim of every block
_MAX_BLOCK_BYTES = 4 * 1024 * 1024  # ~4 MiB per buffer (per review guidance)


def _round_up(a, m):
    return -(-a // m) * m


def _sublane(dtype):
    # Sub-32-bit dtypes pack along sublanes: 8 rows/f32, 16 rows/bf16, 32 rows/int8.
    return {4: 8, 2: 16, 1: 32}.get(jnp.dtype(dtype).itemsize, 8)


def _h_sigmoid_kernel(x_ref, o_ref):
    # y = clip(x + 3, 0, 6) / 6   (== ReLU6(x + 3) / 6)
    x = x_ref[...].astype(jnp.float32)
    y = jnp.clip(x + 3.0, 0.0, 6.0) * (1.0 / 6.0)
    o_ref[...] = y.astype(o_ref.dtype)


def h_sigmoid(x):
    """Elementwise h_sigmoid on an arbitrarily shaped array via one Pallas kernel."""
    orig_shape = x.shape
    dtype = x.dtype
    total = x.size
    if total == 0:
        return x

    itemsize = jnp.dtype(dtype).itemsize
    sub = _sublane(dtype)

    # Lane-dense (rows, 128) slab; rows padded only to a sublane multiple
    # (cheap: at most sub*128 - 1 extra elements, and no pad at all for
    # already-aligned sizes).
    rows = _round_up(pl.cdiv(total, _LANE), sub)
    pad = rows * _LANE - total

    xf = x.reshape(-1)
    if pad:
        xf = jnp.pad(xf, (0, pad))
    x2 = xf.reshape(rows, _LANE)

    # Block sizing: target >= 4 grid steps (v7x dual-TC + pipeline overlap),
    # capped at ~4 MiB per buffer, rounded to the dtype's sublane multiple.
    max_block_rows = max(sub, _MAX_BLOCK_BYTES // (_LANE * itemsize))
    block_rows = min(max_block_rows, _round_up(pl.cdiv(rows, 4), sub))
    block_rows = max(sub, min(block_rows, rows))
    grid = pl.cdiv(rows, block_rows)  # ragged last block is masked by Pallas

    y2 = pl.pallas_call(
        _h_sigmoid_kernel,
        out_shape=jax.ShapeDtypeStruct((rows, _LANE), dtype),
        grid_spec=pltpu.PrefetchScalarGridSpec(
            num_scalar_prefetch=0,
            grid=(grid,),
            in_specs=[pl.BlockSpec((block_rows, _LANE), lambda i: (i, 0))],
            out_specs=pl.BlockSpec((block_rows, _LANE), lambda i: (i, 0)),
        ),
        compiler_params=pltpu.CompilerParams(
            dimension_semantics=("parallel",),
        ),
    )(x2)

    y = y2.reshape(-1)
    if pad:
        y = y[:total]
    return y.reshape(orig_shape)


@jax.jit
def h_sigmoid_forward(x):
    return h_sigmoid(x)


if __name__ == "__main__":
    key = jax.random.PRNGKey(0)
    # NCHW input, same convention as the PyTorch module (shape is arbitrary for
    # an elementwise op; small shape consistent with the module's usage).
    x = jax.random.normal(key, (2, 4, 16, 16), jnp.float32) * 4.0

    out = h_sigmoid_forward(x)
    out = jax.block_until_ready(out)

    assert out.shape == x.shape, out.shape
    assert bool(jnp.all(jnp.isfinite(out)))

    # Correctness check against the plain-JAX reference of ReLU6(x + 3) / 6.
    ref = jnp.clip(x + 3.0, 0.0, 6.0) / 6.0
    assert bool(jnp.max(jnp.abs(out - ref)) < 1e-6)

    # Also exercise a non-lane-aligned shape to cover the ragged-block path.
    x2 = jax.random.normal(jax.random.PRNGKey(1), (3, 5, 7, 11), jnp.float32) * 4.0
    out2 = jax.block_until_ready(h_sigmoid_forward(x2))
    ref2 = jnp.clip(x2 + 3.0, 0.0, 6.0) / 6.0
    assert out2.shape == x2.shape
    assert bool(jnp.max(jnp.abs(out2 - ref2)) < 1e-6)

    print("KERNEL_OK")
</pallas_src>

<mosaic_0001>
module attributes {stable_mosaic.version = 11 : i64} {
  func.func @_h_sigmoid_kernel(%arg0: i32, %arg1: memref<8x128xf32, #tpu.memory_space<vmem>>, %arg2: memref<8x128xf32, #tpu.memory_space<vmem>>) attributes {dimension_semantics = [#tpu.dimension_semantics<parallel>], iteration_bounds = array<i64: 2>, scalar_prefetch = 0 : i64, scratch_operands = 0 : i64, tpu.core_type = #tpu.core_type<tc>, window_params = [{transform_indices = @transform_0, window_bounds = array<i64: 8, 128>}, {transform_indices = @transform_1, window_bounds = array<i64: 8, 128>}]} {
    %c0 = arith.constant 0 : index
    %c0_0 = arith.constant 0 : index
    %0 = vector.load %arg1[%c0, %c0_0] : memref<8x128xf32, #tpu.memory_space<vmem>>, vector<8x128xf32>
    %cst = arith.constant 3.000000e+00 : f32
    %1 = vector.broadcast %cst : f32 to vector<8x128xf32>
    %2 = arith.addf %0, %1 : vector<8x128xf32>
    %cst_1 = arith.constant 0.000000e+00 : f32
    %cst_2 = arith.constant 6.000000e+00 : f32
    %3 = vector.broadcast %cst_1 : f32 to vector<8x128xf32>
    %4 = arith.maximumf %3, %2 : vector<8x128xf32>
    %5 = vector.broadcast %cst_2 : f32 to vector<8x128xf32>
    %6 = arith.minimumf %5, %4 : vector<8x128xf32>
    %cst_3 = arith.constant 0.166666672 : f32
    %7 = vector.broadcast %cst_3 : f32 to vector<8x128xf32>
    %8 = arith.mulf %6, %7 : vector<8x128xf32>
    %c0_4 = arith.constant 0 : index
    %c0_5 = arith.constant 0 : index
    %9 = vector.load %arg2[%c0_4, %c0_5] : memref<8x128xf32, #tpu.memory_space<vmem>>, vector<8x128xf32>
    tpu.vector_store %arg2[%c0_4, %c0_5], %8 {strides = array<i32>} : memref<8x128xf32, #tpu.memory_space<vmem>>, vector<8x128xf32>,
    return
  }
  func.func @transform_0(%arg0: i32) -> (i32, i32) {
    %c0_i32 = arith.constant 0 : i32
    %c0_i32_0 = arith.constant 0 : i32
    return %arg0, %c0_i32 : i32, i32
  }
  func.func @transform_1(%arg0: i32) -> (i32, i32) {
    %c0_i32 = arith.constant 0 : i32
    %c0_i32_0 = arith.constant 0 : i32
    return %arg0, %c0_i32 : i32, i32
  }
}

</mosaic_0001>

<bundles_post_ra>
// kernel: h_sigmoid_forward.1
= control target key start
LH: loop header
LB: loop body
LE: loop exit
PB: predicated region body
PF: predicated region fallthrough
CT: control target
= control target key end

     0   :  { %s192_s6 = smov 0   ;;  %s212_s0 = inlined_call_operand.vmem [shape: f32[16,128], index: 0, kind: input, shape index: {}]   ;;  %s213_s1 = inlined_call_operand.vmem [shape: f32[16,128], index: 1, kind: output, shape index: {}]  }
   0x1 LB: > { %s171_s7 = sadd.s32 4294967295, %s194_s6   ;;  %p175_p0 = scmp.ge.s32.totalorder %s194_s6, 1  ;;  %s194_s6 = sphi %s192_s6, %s11_s6  }
   0x2   : > { %p86_p1 = scmp.lt.s32.totalorder %s194_s6, 3 }
   0x4   : > { %p87_p2 = pnand %p175_p0, %p86_p1 }
   0x5   : > { %p104_p3 = scmp.lt.s32.totalorder (!%p87_p2), %s171_s7, 1 }
   0x6   : > { %90 = sbr.rel (%p87_p2) target bundleno = 26 (0x1a), region = 24 }
   0xd   : > { %s215_s7 = smov (!%p104_p3, %s171_s7), 1 }
   0xe   : > { %s176_s8 = sshll.u32 %s215_s7, 3 }
   0xf   : > { %s107_s11 = scalar_lea.vmem %s212_s0, %s176_s8  ;;  %s111_s14 = scalar_lea.vmem %s213_s1, %s176_s8 }
  0x10   : > { %v112_v0 = vld [vmem:[%s107_s11] sm:$0xff] }
  0x11   : > { %v113_v1 = vadd.f32 3.0, %v112_v0 }
  0x13   : > { %v114_v2 = vmax.f32 %v113_v1, 0.0 }
  0x15   : > { %v115_v3 = vmin.f32 %v114_v2, 6.0 }
  0x17   : > { %v116_v4 = vmul.f32 0.16666667, %v115_v3 }
  0x19   : > { %117 = vst [vmem:[%s111_s14] sm:$0xff] %v116_v4 }
  0x1a PF: > { %s11_s6 = sadd.s32 1, %s194_s6  }
  0x1b   : > { %p8_p4 = scmp.ge.s32.totalorder %s11_s6, 4  }
  0x1d   :  { %10 = sbr.rel (!%p8_p4) target bundleno = 1 (0x1), region = 54 }

</bundles_post_ra>
